<compile_context>
chip_gen: v5e
topology: v5e:2x2
jax: 0.10.0
libtpu: 0.0.40
codegen_flags: <defaults>
</compile_context>

<pallas_src>
import functools

import jax
import jax.numpy as jnp
from jax.experimental import pallas as pl
from jax.experimental.pallas import tpu as pltpu

LANE = 128      # lane width (last-dim tiling unit)
SUBLANE = 8     # sublane height (second-to-last-dim tiling unit, f32)


def _round_up(x: int, m: int) -> int:
    return ((x + m - 1) // m) * m


def _cdiv(a: int, b: int) -> int:
    return -(-a // b)


def _vmem_capacity_bytes() -> int:
    """Per-TensorCore VMEM capacity; conservative 64 MiB (v7x) fallback."""
    try:
        return int(pltpu.get_tpu_info().vmem_capacity_bytes)
    except Exception:
        return 64 << 20


# ---------------------------------------------------------------------------
# Fused kernel: x -> [Linear (-> Tanh)]*  — the whole chain in one body.
# ---------------------------------------------------------------------------
def _fused_mlp_kernel(x_ref, *refs, acts):
    # refs = (w_0, b_0, w_1, b_1, ..., w_{L-1}, b_{L-1}, out_ref)
    out_ref = refs[-1]
    h = x_ref[...].astype(jnp.float32)
    for i, act in enumerate(acts):
        w = refs[2 * i][...]                 # (Din_pad_i, Dout_pad_i), f32 or bf16
        b = refs[2 * i + 1][...].astype(jnp.float32)   # (1, Dout_pad_i)
        lhs = h.astype(w.dtype) if w.dtype != jnp.float32 else h
        h = jnp.dot(lhs, w, preferred_element_type=jnp.float32) + b
        if act:                              # Tanh after every Linear except the last
            h = jnp.tanh(h)
    out_ref[...] = h.astype(out_ref.dtype)


# ---------------------------------------------------------------------------
# One-time parameter preparation (padding hoisted out of the forward pass)
# ---------------------------------------------------------------------------
def prepare_mlp_params(params, in_dim, *, weight_dtype=None):
    """Zero-pad every weight/bias ONCE to lane-dense shapes.

    params: list of (w, b) with w: (Din_i, Dout_i)  (PyTorch Linear weight, transposed)
    weight_dtype=jnp.bfloat16 stores weights in bf16 (full MXU rate, half the
    weight HBM/VMEM traffic); accumulation / bias / tanh stay f32.
    """
    dims = [int(in_dim)] + [int(w.shape[1]) for (w, _) in params]
    pdims = [_round_up(d, LANE) for d in dims]
    padded = []
    for i, (w, b) in enumerate(params):
        din, dout = int(w.shape[0]), int(w.shape[1])
        if din != dims[i]:
            raise ValueError(f"layer {i}: w.shape[0]={din} != previous out dim {dims[i]}")
        if b.shape != (dout,):
            raise ValueError(f"layer {i}: bias shape {b.shape} != ({dout},)")
        w_p = jnp.pad(w, ((0, pdims[i] - din), (0, pdims[i + 1] - dout)))
        if weight_dtype is not None:
            w_p = w_p.astype(weight_dtype)
        b_p = jnp.pad(b.reshape(1, -1), ((0, 0), (0, pdims[i + 1] - dout))).astype(jnp.float32)
        padded.append((w_p, b_p))
    return {"dims": dims, "pdims": pdims, "padded": padded}


# ---------------------------------------------------------------------------
# Single fused pallas_call over a chain of layers
# ---------------------------------------------------------------------------
def _run_chain(x_p, layers, acts, pdims, out_dtype, grid_n, tb, vmem_cap):
    """x_p: (grid_n*tb, pdims[0]) lane/sublane aligned; layers: [(w_p, b_p), ...]."""
    n_layers = len(layers)
    B_tiled = x_p.shape[0]
    Din_p, Dout_p = pdims[0], pdims[-1]
    flat = []
    for (w_p, b_p) in layers:
        flat += [w_p, b_p]
    kernel = functools.partial(_fused_mlp_kernel, acts=tuple(acts))
    out_shape = jax.ShapeDtypeStruct((B_tiled, Dout_p), out_dtype)

    weight_bytes = sum(int(a.size) * a.dtype.itemsize for a in flat)
    interm_bytes = 2 * tb * max(pdims) * 4           # live f32 intermediates

    if grid_n == 1:
        # Grid-less path: every operand fully VMEM-resident, one invocation.
        act_bytes = (int(x_p.size) * x_p.dtype.itemsize
                     + B_tiled * Dout_p * jnp.dtype(out_dtype).itemsize)
        vmem_need = int(1.25 * (weight_bytes + act_bytes + interm_bytes)) + (2 << 20)
        vmem_limit = int(min(max(vmem_need, 32 << 20), vmem_cap))
        vmem = pl.BlockSpec(memory_space=pltpu.MemorySpace.VMEM)
        return pl.pallas_call(
            kernel,
            out_shape=out_shape,
            in_specs=[vmem] * (1 + 2 * n_layers),
            out_specs=vmem,
            compiler_params=pltpu.CompilerParams(vmem_limit_bytes=vmem_limit),
        )(x_p, *flat)

    # Batch-tiled path: activations double-buffered; weights/biases have a
    # constant index_map so they are single-buffered (pl.Buffered(1)).
    in_specs = [pl.BlockSpec((tb, Din_p), lambda i: (i, 0))]
    for li in range(n_layers):
        din_p, dout_p = pdims[li], pdims[li + 1]
        in_specs.append(pl.BlockSpec((din_p, dout_p), lambda i: (0, 0),
                                     pipeline_mode=pl.Buffered(1)))
        in_specs.append(pl.BlockSpec((1, dout_p), lambda i: (0, 0),
                                     pipeline_mode=pl.Buffered(1)))
    act_bytes = 2 * tb * (Din_p * x_p.dtype.itemsize
                          + Dout_p * jnp.dtype(out_dtype).itemsize)
    vmem_need = int(1.25 * (weight_bytes + act_bytes + interm_bytes)) + (2 << 20)
    vmem_limit = int(min(max(vmem_need, 32 << 20), vmem_cap))
    return pl.pallas_call(
        kernel,
        out_shape=out_shape,
        grid=(grid_n,),
        in_specs=in_specs,
        out_specs=pl.BlockSpec((tb, Dout_p), lambda i: (i, 0)),
        compiler_params=pltpu.CompilerParams(
            dimension_semantics=("parallel",),   # shards batch tiles across TCs on v7x
            vmem_limit_bytes=vmem_limit,
        ),
    )(x_p, *flat)


# ---------------------------------------------------------------------------
# Forward wrapper
# ---------------------------------------------------------------------------
def mlp_forward(x, prepared, *, block_b: int = 512, vmem_fraction: float = 0.75,
                force_per_layer: bool = False):
    """Fused MLP forward. x: (B, Din); prepared: from prepare_mlp_params."""
    dims, pdims, padded = prepared["dims"], prepared["pdims"], prepared["padded"]
    B, Din = x.shape
    if Din != dims[0]:
        raise ValueError(f"x feature dim {Din} != expected {dims[0]}")
    Dout, Dout_p = dims[-1], pdims[-1]

    vmem_cap = _vmem_capacity_bytes()

    # Batch tiling: sublane-align, then split evenly into tiles <= block_b
    # (no rounding of the batch up to a full multiple of block_b).
    B_pad = _round_up(max(B, 1), SUBLANE)
    if B_pad <= block_b:
        grid_n, tb = 1, B_pad
    else:
        grid_n = _cdiv(B_pad, block_b)
        tb = _round_up(_cdiv(B_pad, grid_n), SUBLANE)
        grid_n = _cdiv(B_pad, tb)
    B_tiled = grid_n * tb

    # Pad x at most once, and only when actually needed.
    if B_tiled != B or pdims[0] != Din:
        x_p = jnp.pad(x, ((0, B_tiled - B), (0, pdims[0] - Din)))
    else:
        x_p = x

    # VMEM budget guard (v7x has 64 MiB/TC vs 128 MiB on v5e/v6e).
    weight_bytes = sum(int(w.size) * w.dtype.itemsize + int(b.size) * b.dtype.itemsize
                       for (w, b) in padded)
    act_budget = 4 * tb * max(pdims) * 4
    fused_fits = (weight_bytes + act_budget) <= int(vmem_fraction * vmem_cap)

    if fused_fits and not force_per_layer:
        acts = [i < len(padded) - 1 for i in range(len(padded))]
        out_p = _run_chain(x_p, padded, acts, pdims, x.dtype, grid_n, tb, vmem_cap)
    else:
        # Fallback: one pallas_call per layer (each layer's weights resident).
        # TODO(synk): for latency-bound small batches, manually double-buffer layer
        # i+1's weight DMA against layer i's matmul instead of per-layer calls.
        h = x_p
        for i, layer in enumerate(padded):
            acts = [i < len(padded) - 1]
            h = _run_chain(h, [layer], acts, pdims[i:i + 2], x.dtype, grid_n, tb, vmem_cap)
        out_p = h

    if out_p.shape != (B, Dout):
        out_p = out_p[:B, :Dout]
    return out_p


# ---------------------------------------------------------------------------
# Params + pure-JAX reference
# ---------------------------------------------------------------------------
def init_mlp_params(key, sizes, dtype=jnp.float32):
    """nn.Linear-style init. Weight stored as (in, out) = PyTorch weight.T."""
    params = []
    for i in range(len(sizes) - 1):
        fan_in, fan_out = sizes[i], sizes[i + 1]
        key, kw, kb = jax.random.split(key, 3)
        bound = 1.0 / (fan_in ** 0.5)
        w = jax.random.uniform(kw, (fan_in, fan_out), dtype, -bound, bound)
        b = jax.random.uniform(kb, (fan_out,), dtype, -bound, bound)
        params.append((w, b))
    return params


def mlp_forward_ref(x, params):
    for i, (w, b) in enumerate(params):
        x = jnp.dot(x, w, precision=jax.lax.Precision.HIGHEST) + b
        if i < len(params) - 1:
            x = jnp.tanh(x)
    return x


if __name__ == "__main__":
    sizes = (32, 64, 16)   # MLP(sizes): Linear(32,64) -> Tanh -> Linear(64,16)

    key = jax.random.PRNGKey(0)
    key, kx, kx2 = jax.random.split(key, 3)
    params = init_mlp_params(key, sizes)
    prepared = prepare_mlp_params(params, sizes[0])           # pad once at init

    # 1) Small batch: grid-less fused kernel.
    batch = 8
    x = jax.random.normal(kx, (batch, sizes[0]), jnp.float32)
    out = jax.block_until_ready(mlp_forward(x, prepared))
    ref = mlp_forward_ref(x, params)
    assert out.shape == (batch, sizes[-1])
    assert jnp.allclose(out, ref, atol=1e-4, rtol=1e-4), "mismatch (small batch)"

    # 2) Odd larger batch: batch-tiled fused path (grid > 1, even tail-friendly split).
    batch2 = 300
    x2 = jax.random.normal(kx2, (batch2, sizes[0]), jnp.float32)
    out2 = jax.block_until_ready(mlp_forward(x2, prepared, block_b=128))
    ref2 = mlp_forward_ref(x2, params)
    assert out2.shape == (batch2, sizes[-1])
    assert jnp.allclose(out2, ref2, atol=1e-4, rtol=1e-4), "mismatch (tiled batch)"

    # 3) Per-layer fallback path (used automatically when weights exceed the VMEM budget).
    out3 = jax.block_until_ready(mlp_forward(x, prepared, force_per_layer=True))
    assert jnp.allclose(out3, ref, atol=1e-4, rtol=1e-4), "mismatch (per-layer fallback)"

    # 4) bf16-weight path (f32 accumulation) — coarse tolerance.
    prepared_bf16 = prepare_mlp_params(params, sizes[0], weight_dtype=jnp.bfloat16)
    out4 = jax.block_until_ready(mlp_forward(x, prepared_bf16))
    assert jnp.allclose(out4, ref, atol=5e-2, rtol=5e-2), "mismatch (bf16 weights)"

    print("KERNEL_OK")
</pallas_src>

<mosaic_0001>
module attributes {stable_mosaic.version = 11 : i64} {
  func.func @_fused_mlp_kernel(%arg0: memref<8x128xf32, #tpu.memory_space<vmem>>, %arg1: memref<128x128xf32, #tpu.memory_space<vmem>>, %arg2: memref<1x128xf32, #tpu.memory_space<vmem>>, %arg3: memref<128x128xf32, #tpu.memory_space<vmem>>, %arg4: memref<1x128xf32, #tpu.memory_space<vmem>>, %arg5: memref<8x128xf32, #tpu.memory_space<vmem>>) attributes {dimension_semantics = [], scalar_prefetch = 0 : i64, scratch_operands = 0 : i64, tpu.core_type = #tpu.core_type<tc>} {
    %c0 = arith.constant 0 : index
    %c0_0 = arith.constant 0 : index
    %0 = vector.load %arg0[%c0, %c0_0] : memref<8x128xf32, #tpu.memory_space<vmem>>, vector<8x128xf32>
    %c0_1 = arith.constant 0 : index
    %c0_2 = arith.constant 0 : index
    %1 = vector.load %arg1[%c0_1, %c0_2] : memref<128x128xf32, #tpu.memory_space<vmem>>, vector<128x128xf32>
    %c0_3 = arith.constant 0 : index
    %c0_4 = arith.constant 0 : index
    %2 = vector.load %arg2[%c0_3, %c0_4] : memref<1x128xf32, #tpu.memory_space<vmem>>, vector<1x128xf32>
    %cst = arith.constant dense<0.000000e+00> : vector<8x128xf32>
    %3 = tpu.matmul %0, %1, %cst {dimension_numbers = #tpu.dot_dimension_numbers<[1], [0], [0], [1], [0, 0, 1, 1], [], []>} : vector<8x128xf32>, vector<128x128xf32>, vector<8x128xf32> -> vector<8x128xf32>
    %4 = vector.broadcast %2 : vector<1x128xf32> to vector<8x128xf32>
    %5 = arith.addf %3, %4 : vector<8x128xf32>
    %6 = math.tanh %5 : vector<8x128xf32>
    %c0_5 = arith.constant 0 : index
    %c0_6 = arith.constant 0 : index
    %7 = vector.load %arg3[%c0_5, %c0_6] : memref<128x128xf32, #tpu.memory_space<vmem>>, vector<128x128xf32>
    %c0_7 = arith.constant 0 : index
    %c0_8 = arith.constant 0 : index
    %8 = vector.load %arg4[%c0_7, %c0_8] : memref<1x128xf32, #tpu.memory_space<vmem>>, vector<1x128xf32>
    %cst_9 = arith.constant dense<0.000000e+00> : vector<8x128xf32>
    %9 = tpu.matmul %6, %7, %cst_9 {dimension_numbers = #tpu.dot_dimension_numbers<[1], [0], [0], [1], [0, 0, 1, 1], [], []>} : vector<8x128xf32>, vector<128x128xf32>, vector<8x128xf32> -> vector<8x128xf32>
    %10 = vector.broadcast %8 : vector<1x128xf32> to vector<8x128xf32>
    %11 = arith.addf %9, %10 : vector<8x128xf32>
    %c0_10 = arith.constant 0 : index
    %c0_11 = arith.constant 0 : index
    %12 = vector.load %arg5[%c0_10, %c0_11] : memref<8x128xf32, #tpu.memory_space<vmem>>, vector<8x128xf32>
    tpu.vector_store %arg5[%c0_10, %c0_11], %11 {strides = array<i32>} : memref<8x128xf32, #tpu.memory_space<vmem>>, vector<8x128xf32>,
    return
  }
}

</mosaic_0001>

<bundles_post_ra>
// kernel: tpu_custom_call.1
= control target key start
LH: loop header
LB: loop body
LE: loop exit
PB: predicated region body
PF: predicated region fallthrough
CT: control target
= control target key end

     0   :  { %10 = vsyncpa [#allocation3], 0  ;;  %s333_s0 = inlined_call_operand.hbm [shape: f32[8,128], index: 0, kind: input, shape index: {}]   ;;  %s334_s1 = inlined_call_operand.hbm [shape: f32[128,128], index: 1, kind: input, shape index: {}]   ;;  %s335_s2 = inlined_call_operand.vmem [shape: f32[1,128], index: 2, kind: input, shape index: {}]   ;;  %s336_s3 = inlined_call_operand.hbm [shape: f32[128,128], index: 3, kind: input, shape index: {}]   ;;  %s337_s4 = inlined_call_operand.vmem [shape: f32[1,128], index: 4, kind: input, shape index: {}]   ;;  %s338_s5 = inlined_call_operand.hbm [shape: f32[8,128], index: 5, kind: output, shape index: {}]  }
   0x1   :  { %11 = vsyncpa [#allocation6], 0  ;;  %s28_s20 = sshll.u32 %s334_s1, 4  ;;  %s29_s20 = int_to_ptr.hbm [resolvable:$true] %s28_s20 }
   0x2   :  { %12 = vsyncpa [#allocation4], 0  ;;  %s279_s21 = smov [#allocation5]   ;;  %s18_s25 = sshll.u32 %s333_s0, 4  ;;  %s19_s25 = int_to_ptr.hbm [resolvable:$true] %s18_s25 }
   0x3   :  { %s30_s22 = sshll.u32 %s279_s21, 4  ;;  %s280_s26 = smov 128   ;;  %s31_s22 = int_to_ptr.vmem [resolvable:$true] %s30_s22 }
   0x4   :  { %s281_s27 = smov 8   ;;  %s282_s28 = smov [#allocation2]  }
   0x5   :  { %36 = dma.hbm_to_vmem [thread:$0]  %s29_s20, 2048, %s31_s22, [#allocation6], %s280_s26, %s280_s26, %s281_s27  }
   0x6   :  { %s20_s29 = sshll.u32 %s282_s28, 4  ;;  %s43_s7 = sshll.u32 %s336_s3, 4  ;;  %s21_s29 = int_to_ptr.vmem [resolvable:$true] %s20_s29  ;;  %s44_s7 = int_to_ptr.hbm [resolvable:$true] %s43_s7 }
   0x7   :  { %23 = dma.hbm_to_vmem [thread:$0]  %s19_s25, 128, %s21_s29, [#allocation3]  }
   0x8   :  { %s283_s1 = smov [#allocation7]  }
   0x9   :  { %s45_s8 = sshll.u32 %s283_s1, 4  ;;  %s46_s8 = int_to_ptr.vmem [resolvable:$true] %s45_s8 }
   0xa   :  { %51 = dma.hbm_to_vmem [thread:$0]  %s44_s7, 2048, %s46_s8, [#allocation6], %s280_s26, %s280_s26, %s281_s27  }
   0xb   :  { %273 = dma.done.wait [#allocation3], 128  }
   0xc   :  { %274 = vsyncadd [#allocation3], 4294967168 }
   0xd   :  { %275 = dma.done.wait [#allocation6], 4096  }
   0xe   :  { %276 = vsyncadd [#allocation6], 4294963200  ;;  %v82_v0 = vld [vmem:[#allocation5 + $0x78] sm:$0xff]  ;;  %v81_v1 = vld [vmem:[#allocation5 + $0x70] sm:$0xff]  ;;  %s284_s11 = smov [#allocation8]   ;;  %s156_s15 = sshll.u32 %s338_s5, 4  ;;  %s157_s15 = int_to_ptr.hbm [resolvable:$true] %s156_s15 }
   0xf   :  { %87 = vmatpush.msra.mxu0 %v82_v0  ;;  %v80_v2 = vld [vmem:[#allocation5 + $0x68] sm:$0xff]  ;;  %v79_v3 = vld [vmem:[#allocation5 + $0x60] sm:$0xff]  ;;  %v123_v4 = vld [vmem:[#allocation7 + $0x78] sm:$0xff]  ;;  %s154_s12 = sshll.u32 %s284_s11, 4  ;;  %s155_s12 = int_to_ptr.vmem [resolvable:$true] %s154_s12 }
  0x10   :  { %v78_v5 = vld [vmem:[#allocation5 + $0x58] sm:$0xff]  ;;  %128 = vmatpush.msra.mxu1 %v123_v4  ;;  %v122_v6 = vld [vmem:[#allocation7 + $0x70] sm:$0xff]  ;;  %v121_v7 = vld [vmem:[#allocation7 + $0x68] sm:$0xff] }
  0x11   :  { %88 = vmatpush.msra.mxu0 %v81_v1  ;;  %v77_v8 = vld [vmem:[#allocation5 + $0x50] sm:$0xff]  ;;  %v120_v9 = vld [vmem:[#allocation7 + $0x60] sm:$0xff]  ;;  %v76_v10 = vld [vmem:[#allocation5 + $0x48] sm:$0xff] }
  0x12   :  { %129 = vmatpush.msra.mxu1 %v122_v6  ;;  %v119_v11 = vld [vmem:[#allocation7 + $0x58] sm:$0xff]  ;;  %v75_v12 = vld [vmem:[#allocation5 + $0x40] sm:$0xff]  ;;  %v118_v13 = vld [vmem:[#allocation7 + $0x50] sm:$0xff] }
  0x13   :  { %89 = vmatpush.msra.mxu0 %v80_v2  ;;  %v74_v14 = vld [vmem:[#allocation5 + $0x38] sm:$0xff]  ;;  %v117_v15 = vld [vmem:[#allocation7 + $0x48] sm:$0xff]  ;;  %v73_v16 = vld [vmem:[#allocation5 + $0x30] sm:$0xff] }
  0x14   :  { %130 = vmatpush.msra.mxu1 %v121_v7  ;;  %v116_v17 = vld [vmem:[#allocation7 + $0x40] sm:$0xff]  ;;  %v72_v18 = vld [vmem:[#allocation5 + $0x28] sm:$0xff]  ;;  %v115_v19 = vld [vmem:[#allocation7 + $0x38] sm:$0xff] }
  0x15   :  { %90 = vmatpush.msra.mxu0 %v79_v3  ;;  %v71_v20 = vld [vmem:[#allocation5 + $0x20] sm:$0xff]  ;;  %v114_v21 = vld [vmem:[#allocation7 + $0x30] sm:$0xff]  ;;  %v70_v22 = vld [vmem:[#allocation5 + $0x18] sm:$0xff] }
  0x16   :  { %131 = vmatpush.msra.mxu1 %v120_v9  ;;  %v113_v23 = vld [vmem:[#allocation7 + $0x28] sm:$0xff]  ;;  %v69_v24 = vld [vmem:[#allocation5 + $0x10] sm:$0xff]  ;;  %v67_v26 = vld [vmem:[#allocation5] sm:$0xff] }
  0x17   :  { %91 = vmatpush.msra.mxu0 %v78_v5  ;;  %v68_v25 = vld [vmem:[#allocation5 + $0x8] sm:$0xff]  ;;  %v66_v27 = vld [vmem:[#allocation2] sm:$0xff]  ;;  %v112_v28 = vld [vmem:[#allocation7 + $0x20] sm:$0xff] }
  0x18   :  { %132 = vmatpush.msra.mxu1 %v119_v11  ;;  %v111_v29 = vld [vmem:[#allocation7 + $0x18] sm:$0xff]  ;;  %v110_v30 = vld [vmem:[#allocation7 + $0x10] sm:$0xff]  ;;  %v109_v31 = vld [vmem:[#allocation7 + $0x8] sm:$0xff] }
  0x19   :  { %92 = vmatpush.msra.mxu0 %v77_v8  ;;  %v108_v32 = vld [vmem:[#allocation7] sm:$0xff]  ;;  %v173_v33 = vld [vmem:[%s335_s2] ss:$0 sm:$0xff] }
  0x1a   :  { %133 = vmatpush.msra.mxu1 %v118_v13  ;;  %v174_v37 = vld [vmem:[%s337_s4] ss:$0 sm:$0xff] }
  0x1b   :  { %93 = vmatpush.msra.mxu0 %v76_v10 }
  0x1c   :  { %134 = vmatpush.msra.mxu1 %v117_v15 }
  0x1d   :  { %94 = vmatpush.msra.mxu0 %v75_v12 }
  0x1e   :  { %135 = vmatpush.msra.mxu1 %v116_v17 }
  0x1f   :  { %95 = vmatpush.msra.mxu0 %v74_v14 }
  0x20   :  { %136 = vmatpush.msra.mxu1 %v115_v19 }
  0x21   :  { %96 = vmatpush.msra.mxu0 %v73_v16 }
  0x22   :  { %137 = vmatpush.msra.mxu1 %v114_v21 }
  0x23   :  { %97 = vmatpush.msra.mxu0 %v72_v18 }
  0x24   :  { %138 = vmatpush.msra.mxu1 %v113_v23 }
  0x25   :  { %98 = vmatpush.msra.mxu0 %v71_v20 }
  0x26   :  { %139 = vmatpush.msra.mxu1 %v112_v28 }
  0x27   :  { %99 = vmatpush.msra.mxu0 %v70_v22 }
  0x28   :  { %140 = vmatpush.msra.mxu1 %v111_v29 }
  0x29   :  { %100 = vmatpush.msra.mxu0 %v69_v24 }
  0x2a   :  { %141 = vmatpush.msra.mxu1 %v110_v30 }
  0x2b   :  { %101 = vmatpush.msra.mxu0 %v68_v25 }
  0x2c   :  { %142 = vmatpush.msra.mxu1 %v109_v31 }
  0x2d   :  { %102 = vmatpush.msra.mxu0 %v67_v26 }
  0x2e   :  { %103 = vmatmul.f32.vlgmr.msra.gmra.mxu0 %v66_v27  ;;  %143 = vmatpush.msra.mxu1 %v108_v32 }
  0xab   :  { %v104_v34 = vpop.f32.mrf.mxu0 }
  0xac   :  { %v105_v35 = vadd.f32 %v173_v33, %v104_v34 }
  0xae   :  { %175 = vtanh.f32 %v105_v35 }
  0xb4   :  { %v176_v36 = vpop.eup %175 }
  0xb5   :  { %144 = vmatmul.f32.vlgmr.msra.gmra.mxu1 %v176_v36 }
 0x132   :  { %v145_v38 = vpop.f32.mrf.mxu1 }
 0x133   :  { %v146_v39 = vadd.f32 %v174_v37, %v145_v38 }
 0x135   :  { %148 = vst [vmem:[#allocation8] sm:$0xff] %v146_v39 }
 0x136   :  { %159 = dma.vmem_to_hbm [thread:$0]  %s155_s12, 128, %s157_s15, [#allocation4]  }
 0x137   :  { %277 = dma.done.wait [#allocation4], 128  }
 0x138   :  { %278 = vsyncadd [#allocation4], 4294967168 }
 0x139   :  { %164 = vsyncpa [#allocation3], 1 }
 0x13a   :  { %165 = vsyncpa [#allocation6], 1 }
 0x13b   :  { %166 = vsyncpa [#allocation4], 1 }

</bundles_post_ra>
